<compile_context>
chip_gen: v6e
topology: v6e:2x2x1
jax: 0.10.0
libtpu: 0.0.40
codegen_flags: <defaults>
</compile_context>

<pallas_src>
import jax
import jax.numpy as jnp
from jax.experimental import pallas as pl
from jax.experimental.pallas import tpu as pltpu


def _make_kernel(K: int, C_out: int, residual_identity: bool):
    """Per-(n, t_tile) kernel body."""

    def kernel(x_ref, w_ref, g_ref, add_ref, o_ref):
        # x_ref block: (1, C_in, L) with L = TT*V  ->  (C_in, L)
        x = x_ref[0]

        # Fused 1x1 conv for all K partitions at once (BN scale pre-folded
        # into w):  (K*C_out, C_in) @ (C_in, L) -> (K*C_out, L)
        y = jnp.dot(w_ref[...], x, preferred_element_type=jnp.float32)
        y_mm = y if y.dtype == g_ref.dtype else y.astype(g_ref.dtype)

        # Graph aggregation: one lane-dense matmul per partition k against the
        # precomputed block-diagonal adjacency kron(I_TT, A_k):
        #   (C_out, L) @ (L, L), accumulated in f32.
        acc = jnp.dot(y_mm[0:C_out, :], g_ref[0],
                      preferred_element_type=jnp.float32)
        for k in range(1, K):
            acc = acc + jnp.dot(y_mm[k * C_out:(k + 1) * C_out, :], g_ref[k],
                                preferred_element_type=jnp.float32)

        # Folded epilogue: add = (aggregated conv bias)*bn_scale + bn_shift.
        out = acc + add_ref[...]

        if residual_identity:
            out = out + x.astype(jnp.float32)   # identity residual (Cin==Cout)

        o_ref[0] = jnp.maximum(out, 0.0).astype(o_ref.dtype)

    return kernel


def _pick_tile_t(T: int, V: int, C: int) -> int:
    """Largest divisor of T whose block fits a modest VMEM budget; prefer
    TT*V being a multiple of 128 (unmasked full-lane stores / dense rows)."""
    budget = 4 << 20  # bytes per activation slab (keeps v7x's 64 MiB happy)
    best = 1
    for cand in range(T, 0, -1):
        if T % cand:
            continue
        if cand * V * C * 4 > budget:
            continue
        if (cand * V) % 128 == 0:
            return cand
        best = max(best, cand) if best == 1 else best
        if best == 1:
            best = cand
    return best


def spatial_basic_block(
    x_nctv,          # (N, C_in, T, V)   -- PyTorch NCHW layout (kept as-is)
    A,               # (>=K, V, V)       -- adjacency stack
    conv_w,          # (K*C_out, C_in)   -- 1x1 conv weight (kernel dims squeezed)
    conv_b,          # (K*C_out,)        -- 1x1 conv bias
    bn_gamma,        # (C_out,)
    bn_beta,         # (C_out,)
    bn_mean,         # (C_out,)
    bn_var,          # (C_out,)
    *,
    s_kernel_size: int,
    residual: bool = True,
    eps: float = 1e-5,
    tile_t: int | None = None,
    compute_dtype=jnp.float32,   # jnp.bfloat16 recommended on v6e/v7x
):
    N, C_in, T, V = x_nctv.shape
    K = s_kernel_size
    C_out = conv_w.shape[0] // K
    assert (not residual) or (C_in == C_out), \
        "only identity residual implemented"  # TODO(synk): projection residual

    conv_w = conv_w.reshape(K * C_out, C_in)
    if tile_t is None:
        tile_t = _pick_tile_t(T, V, max(C_in, C_out))
    assert T % tile_t == 0, "tile_t must divide T"
    TT = tile_t
    L = TT * V

    # ---- parameter folding (plain JAX, tiny constants) ----
    A32 = A[:K].astype(jnp.float32)                               # (K, V, V)
    scale = bn_gamma / jnp.sqrt(bn_var + eps)                     # (C_out,)
    shift = bn_beta - bn_mean * scale                             # (C_out,)

    # Fold BN scale into the conv weights (everything before BN is linear and
    # the aggregation does not mix channels).
    w_kco = conv_w.reshape(K, C_out, C_in).astype(jnp.float32)
    w_scaled = (w_kco * scale[None, :, None]).reshape(K * C_out, C_in)

    # Conv bias aggregated through A, then BN applied -> one additive constant.
    colsum = A32.sum(axis=1)                                      # (K, V): sum_v A[k,v,w]
    bias_cw = jnp.einsum('kc,kw->cw',
                         conv_b.reshape(K, C_out).astype(jnp.float32), colsum)
    add_cw = bias_cw * scale[:, None] + shift[:, None]            # (C_out, V)
    add_full = jnp.tile(add_cw, (1, TT))                          # (C_out, L)

    # Block-diagonal adjacency so the per-t aggregation becomes one big matmul.
    eye_t = jnp.eye(TT, dtype=jnp.float32)
    G = jax.vmap(lambda a: jnp.kron(eye_t, a))(A32)               # (K, L, L)

    # Metadata-only reshape (NO transpose): (N, C, T, V) -> (N, C, T*V).
    x_flat = x_nctv.reshape(N, C_in, T * V).astype(compute_dtype)
    w_scaled = w_scaled.astype(compute_dtype)
    G = G.astype(compute_dtype)

    kernel = _make_kernel(K, C_out, residual_identity=residual)

    out_flat = pl.pallas_call(
        kernel,
        out_shape=jax.ShapeDtypeStruct((N, C_out, T * V), jnp.float32),
        grid=(N, T // TT),
        in_specs=[
            pl.BlockSpec((1, C_in, L), lambda n, ti: (n, 0, ti)),      # x slab
            pl.BlockSpec((K * C_out, C_in), lambda n, ti: (0, 0)),     # W (scaled)
            pl.BlockSpec((K, L, L), lambda n, ti: (0, 0, 0)),          # kron(I, A_k)
            pl.BlockSpec((C_out, L), lambda n, ti: (0, 0)),            # bias+shift
        ],
        out_specs=pl.BlockSpec((1, C_out, L), lambda n, ti: (n, 0, ti)),
        compiler_params=pltpu.CompilerParams(
            dimension_semantics=("parallel", "parallel")),
    )(x_flat, w_scaled, G, add_full)

    # Metadata-only reshape back to PyTorch layout (N, C_out, T, V).
    return out_flat.reshape(N, C_out, T, V)


def reference(x_nctv, A, conv_w, conv_b, gamma, beta, rm, rv, *,
              s_kernel_size, residual=True, eps=1e-5):
    """Pure-JAX reproduction of the PyTorch forward (eval-mode BN)."""
    K = s_kernel_size
    y = jnp.einsum('dc,nctv->ndtv', conv_w, x_nctv) + conv_b[None, :, None, None]
    n, kc, t, v = y.shape
    c_out = kc // K
    y = y.reshape(n, K, c_out, t, v)
    z = jnp.einsum('nkctv,kvw->nctw', y, A[:K])
    scale = gamma / jnp.sqrt(rv + eps)
    shift = beta - rm * scale
    z = z * scale[None, :, None, None] + shift[None, :, None, None]
    if residual:
        z = z + x_nctv
    return jnp.maximum(z, 0.0)


if __name__ == "__main__":
    # Small shapes consistent with the module's forward:
    #   x: (N, C_in, T, V),  A: (K, V, V),  K = max_graph_distance + 1
    N, C_in, C_out, T, V = 2, 4, 4, 16, 16
    max_graph_distance = 2
    K = max_graph_distance + 1

    key = jax.random.PRNGKey(0)
    ks = jax.random.split(key, 8)
    x = jax.random.normal(ks[0], (N, C_in, T, V), jnp.float32)
    A = jax.random.normal(ks[1], (K, V, V), jnp.float32) * 0.1
    conv_w = jax.random.normal(ks[2], (K * C_out, C_in), jnp.float32) * 0.2
    conv_b = jax.random.normal(ks[3], (K * C_out,), jnp.float32) * 0.1
    bn_gamma = 1.0 + 0.1 * jax.random.normal(ks[4], (C_out,), jnp.float32)
    bn_beta = 0.1 * jax.random.normal(ks[5], (C_out,), jnp.float32)
    bn_mean = 0.1 * jax.random.normal(ks[6], (C_out,), jnp.float32)
    bn_var = jax.random.uniform(ks[7], (C_out,), jnp.float32, 0.5, 1.5)

    # tile_t=8 -> grid=(N, T//8)=(2, 2), both axes parallel; lane dim TT*V=128.
    out = spatial_basic_block(
        x, A, conv_w, conv_b, bn_gamma, bn_beta, bn_mean, bn_var,
        s_kernel_size=K, residual=True, tile_t=8)
    out = jax.block_until_ready(out)

    ref = reference(x, A, conv_w, conv_b, bn_gamma, bn_beta, bn_mean, bn_var,
                    s_kernel_size=K, residual=True)

    assert out.shape == (N, C_out, T, V)
    assert jnp.allclose(out, ref, atol=1e-4, rtol=1e-4), \
        f"max abs err {jnp.max(jnp.abs(out - ref))}"
    print("KERNEL_OK")
</pallas_src>

<mosaic_0001>
module attributes {stable_mosaic.version = 11 : i64} {
  func.func @kernel(%arg0: i32, %arg1: i32, %arg2: memref<1x4x128xf32, #tpu.memory_space<vmem>>, %arg3: memref<12x4xf32, #tpu.memory_space<vmem>>, %arg4: memref<3x128x128xf32, #tpu.memory_space<vmem>>, %arg5: memref<4x128xf32, #tpu.memory_space<vmem>>, %arg6: memref<1x4x128xf32, #tpu.memory_space<vmem>>) attributes {dimension_semantics = [#tpu.dimension_semantics<parallel>, #tpu.dimension_semantics<parallel>], iteration_bounds = array<i64: 2, 2>, scalar_prefetch = 0 : i64, scratch_operands = 0 : i64, tpu.core_type = #tpu.core_type<tc>, window_params = [{transform_indices = @transform_0, window_bounds = array<i64: 1, 4, 128>}, {pipeline_mode = #tpu.pipeline_mode<synchronous>, transform_indices = @transform_1, window_bounds = array<i64: 12, 4>}, {pipeline_mode = #tpu.pipeline_mode<synchronous>, transform_indices = @transform_2, window_bounds = array<i64: 3, 128, 128>}, {pipeline_mode = #tpu.pipeline_mode<synchronous>, transform_indices = @transform_3, window_bounds = array<i64: 4, 128>}, {transform_indices = @transform_4, window_bounds = array<i64: 1, 4, 128>}]} {
    %c0 = arith.constant 0 : index
    %c0_0 = arith.constant 0 : index
    %c0_1 = arith.constant 0 : index
    %0 = vector.load %arg2[%c0, %c0_0, %c0_1] : memref<1x4x128xf32, #tpu.memory_space<vmem>>, vector<1x4x128xf32>
    %1 = vector.shape_cast %0 : vector<1x4x128xf32> to vector<4x128xf32>
    %c0_2 = arith.constant 0 : index
    %c0_3 = arith.constant 0 : index
    %2 = vector.load %arg3[%c0_2, %c0_3] : memref<12x4xf32, #tpu.memory_space<vmem>>, vector<12x4xf32>
    %cst = arith.constant dense<0.000000e+00> : vector<12x128xf32>
    %3 = tpu.matmul %2, %1, %cst {dimension_numbers = #tpu.dot_dimension_numbers<[1], [0], [0], [1], [0, 0, 1, 1], [], []>} : vector<12x4xf32>, vector<4x128xf32>, vector<12x128xf32> -> vector<12x128xf32>
    %4 = vector.extract_strided_slice %3 {offsets = [0, 0], sizes = [4, 128], strides = [1, 1]} : vector<12x128xf32> to vector<4x128xf32>
    %c0_4 = arith.constant 0 : index
    %c0_5 = arith.constant 0 : index
    %c0_6 = arith.constant 0 : index
    %5 = vector.load %arg4[%c0_4, %c0_5, %c0_6] : memref<3x128x128xf32, #tpu.memory_space<vmem>>, vector<1x128x128xf32>
    %6 = vector.shape_cast %5 : vector<1x128x128xf32> to vector<128x128xf32>
    %cst_7 = arith.constant dense<0.000000e+00> : vector<4x128xf32>
    %7 = tpu.matmul %4, %6, %cst_7 {dimension_numbers = #tpu.dot_dimension_numbers<[1], [0], [0], [1], [0, 0, 1, 1], [], []>} : vector<4x128xf32>, vector<128x128xf32>, vector<4x128xf32> -> vector<4x128xf32>
    %8 = vector.extract_strided_slice %3 {offsets = [4, 0], sizes = [4, 128], strides = [1, 1]} : vector<12x128xf32> to vector<4x128xf32>
    %c1 = arith.constant 1 : index
    %c0_8 = arith.constant 0 : index
    %c0_9 = arith.constant 0 : index
    %9 = vector.load %arg4[%c1, %c0_8, %c0_9] : memref<3x128x128xf32, #tpu.memory_space<vmem>>, vector<1x128x128xf32>
    %10 = vector.shape_cast %9 : vector<1x128x128xf32> to vector<128x128xf32>
    %cst_10 = arith.constant dense<0.000000e+00> : vector<4x128xf32>
    %11 = tpu.matmul %8, %10, %cst_10 {dimension_numbers = #tpu.dot_dimension_numbers<[1], [0], [0], [1], [0, 0, 1, 1], [], []>} : vector<4x128xf32>, vector<128x128xf32>, vector<4x128xf32> -> vector<4x128xf32>
    %12 = arith.addf %7, %11 : vector<4x128xf32>
    %13 = vector.extract_strided_slice %3 {offsets = [8, 0], sizes = [4, 128], strides = [1, 1]} : vector<12x128xf32> to vector<4x128xf32>
    %c2 = arith.constant 2 : index
    %c0_11 = arith.constant 0 : index
    %c0_12 = arith.constant 0 : index
    %14 = vector.load %arg4[%c2, %c0_11, %c0_12] : memref<3x128x128xf32, #tpu.memory_space<vmem>>, vector<1x128x128xf32>
    %15 = vector.shape_cast %14 : vector<1x128x128xf32> to vector<128x128xf32>
    %cst_13 = arith.constant dense<0.000000e+00> : vector<4x128xf32>
    %16 = tpu.matmul %13, %15, %cst_13 {dimension_numbers = #tpu.dot_dimension_numbers<[1], [0], [0], [1], [0, 0, 1, 1], [], []>} : vector<4x128xf32>, vector<128x128xf32>, vector<4x128xf32> -> vector<4x128xf32>
    %17 = arith.addf %12, %16 : vector<4x128xf32>
    %c0_14 = arith.constant 0 : index
    %c0_15 = arith.constant 0 : index
    %18 = vector.load %arg5[%c0_14, %c0_15] : memref<4x128xf32, #tpu.memory_space<vmem>>, vector<4x128xf32>
    %19 = arith.addf %17, %18 : vector<4x128xf32>
    %20 = arith.addf %19, %1 : vector<4x128xf32>
    %cst_16 = arith.constant 0.000000e+00 : f32
    %21 = vector.broadcast %cst_16 : f32 to vector<4x128xf32>
    %22 = arith.maximumf %20, %21 : vector<4x128xf32>
    %c0_17 = arith.constant 0 : index
    %c0_18 = arith.constant 0 : index
    %c0_19 = arith.constant 0 : index
    %23 = vector.load %arg6[%c0_17, %c0_18, %c0_19] : memref<1x4x128xf32, #tpu.memory_space<vmem>>, vector<1x4x128xf32>
    %24 = vector.shape_cast %23 : vector<1x4x128xf32> to vector<4x128xf32>
    %25 = vector.shape_cast %22 : vector<4x128xf32> to vector<1x4x128xf32>
    tpu.vector_store %arg6[%c0_17, %c0_18, %c0_19], %25 {strides = array<i32>} : memref<1x4x128xf32, #tpu.memory_space<vmem>>, vector<1x4x128xf32>,
    return
  }
  func.func @transform_0(%arg0: i32, %arg1: i32) -> (i32, i32, i32) {
    %c0_i32 = arith.constant 0 : i32
    %c0_i32_0 = arith.constant 0 : i32
    return %arg0, %c0_i32, %arg1 : i32, i32, i32
  }
  func.func @transform_1(%arg0: i32, %arg1: i32) -> (i32, i32) {
    %c0_i32 = arith.constant 0 : i32
    %c0_i32_0 = arith.constant 0 : i32
    %c0_i32_1 = arith.constant 0 : i32
    return %c0_i32, %c0_i32_0 : i32, i32
  }
  func.func @transform_2(%arg0: i32, %arg1: i32) -> (i32, i32, i32) {
    %c0_i32 = arith.constant 0 : i32
    %c0_i32_0 = arith.constant 0 : i32
    %c0_i32_1 = arith.constant 0 : i32
    %c0_i32_2 = arith.constant 0 : i32
    return %c0_i32, %c0_i32_0, %c0_i32_1 : i32, i32, i32
  }
  func.func @transform_3(%arg0: i32, %arg1: i32) -> (i32, i32) {
    %c0_i32 = arith.constant 0 : i32
    %c0_i32_0 = arith.constant 0 : i32
    %c0_i32_1 = arith.constant 0 : i32
    return %c0_i32, %c0_i32_0 : i32, i32
  }
  func.func @transform_4(%arg0: i32, %arg1: i32) -> (i32, i32, i32) {
    %c0_i32 = arith.constant 0 : i32
    %c0_i32_0 = arith.constant 0 : i32
    return %arg0, %c0_i32, %arg1 : i32, i32, i32
  }
}

</mosaic_0001>

<bundles_post_ra>
// kernel: tpu_custom_call.1
= control target key start
LH: loop header
LB: loop body
LE: loop exit
PB: predicated region body
PF: predicated region fallthrough
CT: control target
= control target key end

     0   :  { %9 = vsyncpa [#allocation3], 0  ;;  %s1341_s0 = inlined_call_operand.vmem [shape: f32[2,4,256], index: 0, kind: input, shape index: {}]   ;;  %s1342_s1 = inlined_call_operand.vmem [shape: f32[12,4], index: 1, kind: input, shape index: {}]   ;;  %s1343_s2 = inlined_call_operand.hbm [shape: f32[3,128,128], index: 2, kind: input, shape index: {}]   ;;  %s1344_s3 = inlined_call_operand.vmem [shape: f32[4,128], index: 3, kind: input, shape index: {}]   ;;  %s1345_s4 = inlined_call_operand.hbm [shape: f32[2,4,256], index: 4, kind: output, shape index: {}]  }
   0x1   :  { %10 = vsyncpa [#allocation4], 0 }
   0x2   :  { %12 = vsyncpa [#allocation4 + $0x1], 0  ;;  %s1123_s15 = smov 0   ;;  %s1125_s16 = smov 0  }
   0x3   :  { %s1127_s17 = smov 0   ;;  %s1129_s18 = smov 0  }
   0x4   :  { %s1131_s19 = smov 0   ;;  %s1133_s20 = smov 0  }
   0x5   :  { %s1135_s21 = smov 0   ;;  %s1137_s22 = smov 0  }
   0x6 LB: > { %s700_s23 = sadd.s32 4294967295, %s1090_s22   ;;  %s701_s24 = sadd.s32 4294967294, %s1090_s22   ;;  %s1090_s22 = sphi %s1137_s22, %s18_s22   ;;  %s1086_s21 = sphi %s1135_s21, %s1357_s21   ;;  %s1082_s20 = sphi %s1133_s20, %s1356_s20   ;;  %s1078_s19 = sphi %s1131_s19, %s1355_s19   ;;  %s1074_s18 = sphi %s1129_s18, %s1354_s18   ;;  %s1070_s17 = sphi %s1127_s17, %s1353_s17   ;;  %s1066_s16 = sphi %s1125_s16, %s1352_s16   ;;  %s1062_s15 = sphi %s1123_s15, %s1351_s15  }
   0x7   : > { %s27_s25 = sadd.s32 1, %s1082_s20  ;;  %s30_s26 = sadd.s32 1, %s1086_s21 }
   0x8   : > { %p28_p0 = scmp.ge.s32.totalorder %s27_s25, 2  ;;  %s130_s27 = sadd.s32 1, %s1070_s17 }
   0x9   : > { %p140_p1 = scmp.ne.s32.totalorder %s1070_s17, %s1066_s16  ;;  %p141_p2 = scmp.eq.s32.totalorder %s700_s23, 3 }
   0xa   : > { %s1359_s25 = smov (%p28_p0, %s27_s25), 0  ;;  %s1361_s26 = smov (!%p28_p0, %s30_s26), %s1086_s21 }
   0xb   : > { %s126_s28 = ssub.s32 %s1082_s20, %s1359_s25  ;;  %p1175_p3 = por %p141_p2, %p140_p1 }
   0xc   : > { %p32_p4 = scmp.ge.s32.totalorder %s1361_s26, 2  ;;  %p146_p5 = scmp.ne.s32.totalorder %s1066_s16, %s1062_s15 }
   0xd   : > { %p147_p6 = scmp.eq.s32.totalorder %s701_s24, 3  ;;  %p702_p7 = scmp.ge.s32.totalorder %s1090_s22, 1 }
   0xe   : > { %s1363_s26 = smov (%p32_p4, %s1361_s26), 0  ;;  %p154_p9 = scmp.lt.s32.totalorder %s1090_s22, 5 }
   0xf   : > { %p1184_p8 = por %p147_p6, %p146_p5  ;;  %s125_s5 = ssub.s32 %s1086_s21, %s1363_s26 }
  0x10   : > { %s127_s6 = sor.u32 %s126_s28, %s125_s5  ;;  %p1191_p10 = pnand %p702_p7, %p154_p9 }
  0x11   : > { %p128_p11 = scmp.eq.s32.totalorder %s127_s6, 0  ;;  %p1195_p12 = scmp.eq.s32.totalorder %s700_s23, 0 }
  0x12   : > { %p888_p13 = pneg %p1191_p10  ;;  %s1092_s10 = smov [#allocation2]  }
  0x13   : > { %s1202_s9 = scalar_select %p128_p11, %s1070_s17, %s130_s27  }
  0x14   : > { %s169_s11 = sshll.u32 %s1092_s10, 4  ;;  %p1206_p0 = pnand %p1195_p12, %p888_p13  ;;  %s170_s11 = int_to_ptr.vmem [resolvable:$true] %s169_s11 }
  0x15   : > { %s979_s13 = scalar_lea.vmem %s170_s11, 6144  ;;  %p987_p6 = scmp.lt.s32.totalorder %s170_s11, %s170_s11 }
  0x16   : > { %p970_p1 = pneg %p1206_p0  ;;  %p980_p2 = scmp.ne.s32.totalorder %s170_s11, %s979_s13 }
  0x17   : > { %p988_p7 = scmp.lt.s32.totalorder %s979_s13, %s979_s13 }
  0x18   : > { %p982_p4 = pnand %p980_p2, %p970_p1 }
  0x19   : > { %p989_p9 = por %p988_p7, %p987_p6 }
  0x1a   : > { %p983_p5 = pneg %p982_p4 }
  0x1c   : > { %p990_p11 = pnand %p989_p9, %p983_p5 }
  0x1e   : > { %993 = shalt.err (!%p990_p11)
}
  0x1f   : > { %s1093_s14 = smov 128   ;;  %s1094_s23 = smov 8  }
  0x20   : > { %891 = dma.hbm_to_vmem [thread:$0]  (!%p1206_p0), %s1343_s2, 6144, %s170_s11, [#allocation3], %s1093_s14, %s1093_s14, %s1094_s23  }
  0x21   : > { %199 = sbr.rel (%p1191_p10) target bundleno = 493 (0x1ed), region = 36 }
  0x26   : > { %1053 = dma.done.wait (%p1195_p12), [#allocation3], 6144  }
  0x27   : > { %1055 = vsyncadd (%p1195_p12), [#allocation3], 4294961152  ;;  %p228_p13 = scmp.lt.s32.totalorder %s1078_s19, 1  ;;  %p230_p1 = scmp.lt.s32.totalorder %s1074_s18, 1  ;;  %v1095_v0 = vmov 0.0   ;;  %vm239_vm0 = vcmask 31744  }
  0x28   : > { %777 = vmatprep.subr.mxu1 %v1095_v0  ;;  %vm246_vm1 = vcmask 1043456   ;;  %v237_v1 = vld [vmem:[%s1342_s1] sm:$0xff]  ;;  %v238_v3 = vld [vmem:[%s1342_s1 + $0x8] sm:$0xf]  ;;  %v357_v4 = vld [vmem:[#allocation2 + $0xf8] sm:$0xff]  ;;  %vm1096_vm2 = vmmov 0  }
  0x29   : > { %s229_s28 = scalar_select %p228_p13, %s1078_s19, 1  ;;  %774 = vmatprep.mubr.msk.f32.mxu0 %vm239_vm0, %v237_v1  ;;  %v340_v5 = vld [vmem:[#allocation2 + $0x78] sm:$0xff]  ;;  %778 = vmatpush3.msra.mxu1 %v357_v4  ;;  %v356_v6 = vld [vmem:[#allocation2 + $0xf0] sm:$0xff]  ;;  %v355_v8 = vld [vmem:[#allocation2 + $0xe8] sm:$0xff] }
  0x2a   : > { %s231_s5 = scalar_select %p230_p1, %s1074_s18, 1  ;;  %779 = vmatprep.subr.mxu1 %v1095_v0  ;;  %v339_v7 = vld [vmem:[#allocation2 + $0x70] sm:$0xff]  ;;  %v338_v9 = vld [vmem:[#allocation2 + $0x68] sm:$0xff]  ;;  %v354_v10 = vld [vmem:[#allocation2 + $0xe0] sm:$0xff]  ;;  %809 = vmatprep.mubr.msk.f32.mxu1 %vm1096_vm2, %v1095_v0 }
  0x2b   : > { %s708_s6 = sshll.u32 %s229_s28, 1  ;;  %780 = vmatpush3.msra.mxu1 %v356_v6  ;;  %v337_v11 = vld [vmem:[#allocation2 + $0x60] sm:$0xff]  ;;  %v353_v12 = vld [vmem:[#allocation2 + $0xd8] sm:$0xff]  ;;  %v352_v14 = vld [vmem:[#allocation2 + $0xd0] sm:$0xff]  ;;  %s225_s27 = sand.u32 1, %s1066_s16  }
  0x2c   : > { %s233_s7 = sadd.s32 %s708_s6, %s231_s5  ;;  %781 = vmatprep.subr.mxu1 %v1095_v0  ;;  %v336_v13 = vld [vmem:[#allocation2 + $0x58] sm:$0xff]  ;;  %v335_v15 = vld [vmem:[#allocation2 + $0x50] sm:$0xff]  ;;  %v351_v16 = vld [vmem:[#allocation2 + $0xc8] sm:$0xff]  ;;  %s707_s28 = sshll.u32 %s225_s27, 2 }
  0x2d   : > { %s709_s10 = sshll.u32 %s233_s7, 2  ;;  %782 = vmatpush3.msra.mxu1 %v355_v8  ;;  %v334_v17 = vld [vmem:[#allocation2 + $0x48] sm:$0xff]  ;;  %v350_v18 = vld [vmem:[#allocation2 + $0xc0] sm:$0xff]  ;;  %v349_v20 = vld [vmem:[#allocation2 + $0xb8] sm:$0xff]  ;;  %s714_s5 = sshll.u32 %s1078_s19, 1 }
  0x2e   : > { %s235_s8 = scalar_lea.vmem %s1341_s0, %s709_s10  ;;  %783 = vmatprep.subr.mxu1 %v1095_v0  ;;  %v333_v19 = vld [vmem:[#allocation2 + $0x40] sm:$0xff]  ;;  %v332_v21 = vld [vmem:[#allocation2 + $0x38] sm:$0xff]  ;;  %v348_v22 = vld [vmem:[#allocation2 + $0xb0] sm:$0xff]  ;;  %s606_s10 = sadd.s32 %s1074_s18, %s714_s5 }
  0x2f   : > { %v1234_v2 = vld [vmem:[%s235_s8] sm:$0xf]  ;;  %784 = vmatpush3.msra.mxu1 %v354_v10  ;;  %v331_v23 = vld [vmem:[#allocation2 + $0x30] sm:$0xff]  ;;  %v347_v24 = vld [vmem:[#allocation2 + $0xa8] sm:$0xff]  ;;  %s715_s11 = sshll.u32 %s606_s10, 6  ;;  %s227_s12 = scalar_lea.vmem [#allocation5], %s707_s28 }
  0x30   : > { %772 = vmatprep.subr.msk.mxu0 %vm246_vm1, %v1234_v2  ;;  %785 = vmatprep.subr.mxu1 %v1095_v0  ;;  %v330_v25 = vld [vmem:[#allocation2 + $0x28] sm:$0xff]  ;;  %v346_v26 = vld [vmem:[#allocation2 + $0xa0] sm:$0xff]  ;;  %v345_v28 = vld [vmem:[#allocation2 + $0x98] sm:$0xff]  ;;  %s610_s8 = sshll.u32 %s227_s12, 4  ;;  %s608_s19 = scalar_lea.hbm %s1345_s4, %s715_s11  ;;  %s611_s8 = int_to_ptr.vmem [resolvable:$true] %s610_s8 }
  0x31   : > { %773 = vmatpush3.msk.msra.mxu0 %vm246_vm1, %v1234_v2  ;;  %786 = vmatpush3.msra.mxu1 %v353_v12  ;;  %v329_v27 = vld [vmem:[#allocation2 + $0x20] sm:$0xff]  ;;  %v328_v29 = vld [vmem:[#allocation2 + $0x18] sm:$0xff]  ;;  %v344_v30 = vld [vmem:[#allocation2 + $0x90] sm:$0xff]  ;;  %s595_s23 = scalar_lea.sflag [#allocation4], %s225_s27  ;;  %s994_s24 = scalar_lea.vmem %s611_s8, 64 }
  0x32   : > { %775 = vmatmul.mubr.msk.f32.vlgmr.msra.gmra.mxu0 %vm239_vm0, %v238_v3  ;;  %812 = vmatprep.subr.mxu0 %v1095_v0  ;;  %v327_v31 = vld [vmem:[#allocation2 + $0x10] sm:$0xff]  ;;  %v326_v32 = vld [vmem:[#allocation2 + $0x8] sm:$0xff]  ;;  %v325_v34 = vld [vmem:[#allocation2] sm:$0xff]  ;;  %p995_p10 = scmp.ne.s32.totalorder %s611_s8, %s994_s24  ;;  %s1097_s18 = smov [#allocation5]  }
  0x33   : > { %813 = vmatpush3.msra.mxu0 %v340_v5  ;;  %787 = vmatprep.subr.mxu1 %v1095_v0  ;;  %v343_v33 = vld [vmem:[#allocation2 + $0x88] sm:$0xff]  ;;  %v342_v35 = vld [vmem:[#allocation2 + $0x80] sm:$0xff]  ;;  %v517_v39 = vld [vmem:[#allocation2 + $0x178] sm:$0xff]  ;;  %s998_s5 = sshll.u32 %s1097_s18, 4  ;;  %s999_s5 = int_to_ptr.vmem [resolvable:$false] %s998_s5 }
  0x34   : > { %814 = vmatprep.subr.mxu0 %v1095_v0  ;;  %788 = vmatpush3.msra.mxu1 %v352_v14  ;;  %v516_v40 = vld [vmem:[#allocation2 + $0x170] sm:$0xff]  ;;  %v515_v41 = vld [vmem:[#allocation2 + $0x168] sm:$0xff]  ;;  %v514_v42 = vld [vmem:[#allocation2 + $0x160] sm:$0xff]  ;;  %p996_p12 = pnand %p995_p10, %p1175_p3  ;;  %s1000_s28 = scalar_lea.vmem %s999_s5, 128 }
  0x35   : > { %815 = vmatpush3.msra.mxu0 %v339_v7  ;;  %789 = vmatprep.subr.mxu1 %v1095_v0  ;;  %v513_v43 = vld [vmem:[#allocation2 + $0x158] sm:$0xff]  ;;  %v512_v44 = vld [vmem:[#allocation2 + $0x150] sm:$0xff]  ;;  %v511_v45 = vld [vmem:[#allocation2 + $0x148] sm:$0xff]  ;;  %p1001_p2 = scmp.lt.s32.totalorder %s611_s8, %s999_s5  ;;  %p1002_p4 = scmp.lt.s32.totalorder %s1000_s28, %s994_s24 }
  0x36   : > { %816 = vmatprep.subr.mxu0 %v1095_v0  ;;  %790 = vmatpush3.msra.mxu1 %v351_v16  ;;  %v510_v46 = vld [vmem:[#allocation2 + $0x140] sm:$0xff]  ;;  %v509_v47 = vld [vmem:[#allocation2 + $0x138] sm:$0xff]  ;;  %v508_v48 = vld [vmem:[#allocation2 + $0x130] sm:$0xff]  ;;  %p997_p0 = pneg %p996_p12 }
  0x37   : > { %817 = vmatpush3.msra.mxu0 %v338_v9  ;;  %791 = vmatprep.subr.mxu1 %v1095_v0  ;;  %v507_v49 = vld [vmem:[#allocation2 + $0x128] sm:$0xff]  ;;  %v506_v50 = vld [vmem:[#allocation2 + $0x120] sm:$0xff]  ;;  %v505_v51 = vld [vmem:[#allocation2 + $0x118] sm:$0xff]  ;;  %p1003_p5 = por %p1002_p4, %p1001_p2 }
  0x38   : > { %818 = vmatprep.subr.mxu0 %v1095_v0  ;;  %792 = vmatpush3.msra.mxu1 %v350_v18  ;;  %v504_v52 = vld [vmem:[#allocation2 + $0x110] sm:$0xff]  ;;  %v503_v53 = vld [vmem:[#allocation2 + $0x108] sm:$0xff]  ;;  %v502_v54 = vld [vmem:[#allocation2 + $0x100] sm:$0xff] }
  0x39   : > { %819 = vmatpush3.msra.mxu0 %v337_v11  ;;  %793 = vmatprep.subr.mxu1 %v1095_v0  ;;  %v589_v61 = vld [vmem:[%s1344_s3] sm:$0xf]  ;;  %p1004_p6 = pnand %p1003_p5, %p997_p0 }
  0x3a   : > { %820 = vmatprep.subr.mxu0 %v1095_v0  ;;  %794 = vmatpush3.msra.mxu1 %v349_v20 }
  0x3b   : > { %821 = vmatpush3.msra.mxu0 %v336_v13  ;;  %795 = vmatprep.subr.mxu1 %v1095_v0 }
  0x3c   : > { %822 = vmatprep.subr.mxu0 %v1095_v0  ;;  %796 = vmatpush3.msra.mxu1 %v348_v22 }
  0x3d   : > { %823 = vmatpush3.msra.mxu0 %v335_v15  ;;  %797 = vmatprep.subr.mxu1 %v1095_v0 }
  0x3e   : > { %824 = vmatprep.subr.mxu0 %v1095_v0  ;;  %798 = vmatpush3.msra.mxu1 %v347_v24 }
  0x3f   : > { %825 = vmatpush3.msra.mxu0 %v334_v17  ;;  %799 = vmatprep.subr.mxu1 %v1095_v0 }
  0x40   : > { %826 = vmatprep.subr.mxu0 %v1095_v0  ;;  %800 = vmatpush3.msra.mxu1 %v346_v26 }
  0x41   : > { %827 = vmatpush3.msra.mxu0 %v333_v19  ;;  %801 = vmatprep.subr.mxu1 %v1095_v0 }
  0x42   : > { %828 = vmatprep.subr.mxu0 %v1095_v0  ;;  %802 = vmatpush3.msra.mxu1 %v345_v28 }
  0x43   : > { %829 = vmatpush3.msra.mxu0 %v332_v21  ;;  %803 = vmatprep.subr.mxu1 %v1095_v0 }
  0x44   : > { %830 = vmatprep.subr.mxu0 %v1095_v0  ;;  %804 = vmatpush3.msra.mxu1 %v344_v30 }
  0x45   : > { %831 = vmatpush3.msra.mxu0 %v331_v23  ;;  %805 = vmatprep.subr.mxu1 %v1095_v0 }
  0x46   : > { %832 = vmatprep.subr.mxu0 %v1095_v0  ;;  %806 = vmatpush3.msra.mxu1 %v343_v33 }
  0x47   : > { %833 = vmatpush3.msra.mxu0 %v330_v25  ;;  %807 = vmatprep.subr.mxu1 %v1095_v0 }
  0x48   : > { %834 = vmatprep.subr.mxu0 %v1095_v0  ;;  %844 = vmatprep.mubr.msk.f32.mxu0 %vm1096_vm2, %v1095_v0 }
  0x49   : > { %835 = vmatpush3.msra.mxu0 %v329_v27  ;;  %808 = vmatpush3.msra.mxu1 %v342_v35 }
  0x4a   : > { %836 = vmatprep.subr.mxu0 %v1095_v0  ;;  %847 = vmatprep.subr.mxu1 %v1095_v0 }
  0x4b   : > { %837 = vmatpush3.msra.mxu0 %v328_v29 }
  0x4c   : > { %838 = vmatprep.subr.mxu0 %v1095_v0 }
  0x4d   : > { %839 = vmatpush3.msra.mxu0 %v327_v31 }
  0x4e   : > { %840 = vmatprep.subr.mxu0 %v1095_v0 }
  0x4f   : > { %841 = vmatpush3.msra.mxu0 %v326_v32 }
  0x50   : > { %842 = vmatprep.subr.mxu0 %v1095_v0 }
  0x51   : > { %843 = vmatpush3.msra.mxu0 %v325_v34 }
  0xf2   : > { %v776_v36 = vpop.f32.mrf.mxu0 }
  0xf4   : > { %v316_v37 = vpop.f32.mrf.mxu0 }
  0xf5   : > { %v359_v38 = vrot.slane %v316_v37, 4  ;;  %845 = vmatmul.mubr.f32.vlgmr.msra.gmra.mxu0 %v316_v37 }
  0xf7   : > { %810 = vmatmul.mubr.f32.vlgmr.msra.gmra.mxu1 %v359_v38 }
  0xf8   : > { %848 = vmatpush3.msra.mxu1 %v517_v39  ;;  %879 = vmatprep.mubr.msk.f32.mxu1 %vm1096_vm2, %v1095_v0 }
  0xf9   : > { %849 = vmatprep.subr.mxu1 %v1095_v0 }
  0xfa   : > { %850 = vmatpush3.msra.mxu1 %v516_v40 }
  0xfb   : > { %851 = vmatprep.subr.mxu1 %v1095_v0 }
  0xfc   : > { %852 = vmatpush3.msra.mxu1 %v515_v41 }
  0xfd   : > { %853 = vmatprep.subr.mxu1 %v1095_v0 }
  0xfe   : > { %854 = vmatpush3.msra.mxu1 %v514_v42 }
  0xff   : > { %855 = vmatprep.subr.mxu1 %v1095_v0 }
 0x100   : > { %856 = vmatpush3.msra.mxu1 %v513_v43 }
 0x101   : > { %857 = vmatprep.subr.mxu1 %v1095_v0 }
 0x102   : > { %858 = vmatpush3.msra.mxu1 %v512_v44 }
 0x103   : > { %859 = vmatprep.subr.mxu1 %v1095_v0 }
 0x104   : > { %860 = vmatpush3.msra.mxu1 %v511_v45 }
 0x105   : > { %861 = vmatprep.subr.mxu1 %v1095_v0 }
 0x106   : > { %862 = vmatpush3.msra.mxu1 %v510_v46 }
 0x107   : > { %863 = vmatprep.subr.mxu1 %v1095_v0 }
 0x108   : > { %864 = vmatpush3.msra.mxu1 %v509_v47 }
 0x109   : > { %865 = vmatprep.subr.mxu1 %v1095_v0 }
 0x10a   : > { %866 = vmatpush3.msra.mxu1 %v508_v48 }
 0x10b   : > { %867 = vmatprep.subr.mxu1 %v1095_v0 }
 0x10c   : > { %868 = vmatpush3.msra.mxu1 %v507_v49 }
 0x10d   : > { %869 = vmatprep.subr.mxu1 %v1095_v0 }
 0x10e   : > { %870 = vmatpush3.msra.mxu1 %v506_v50 }
 0x10f   : > { %871 = vmatprep.subr.mxu1 %v1095_v0 }
 0x110   : > { %872 = vmatpush3.msra.mxu1 %v505_v51 }
 0x111   : > { %873 = vmatprep.subr.mxu1 %v1095_v0 }
 0x112   : > { %874 = vmatpush3.msra.mxu1 %v504_v52 }
 0x113   : > { %875 = vmatprep.subr.mxu1 %v1095_v0 }
 0x114   : > { %876 = vmatpush3.msra.mxu1 %v503_v53 }
 0x115   : > { %877 = vmatprep.subr.mxu1 %v1095_v0 }
 0x116   : > { %878 = vmatpush3.msra.mxu1 %v502_v54 }
 0x117   : > { %880 = vmatmul.mubr.f32.vlgmr.msra.gmra.mxu1 %v776_v36 }
 0x1b5   : > { %v497_v55 = vpop.f32.mrf.mxu0 }
 0x1b7   : > { %v427_v56 = vpop.f32.mrf.mxu1  ;;  %v846_v57 = vpop.f32.mrf.mxu0 }
 0x1b8   : > { %v498_v59 = vadd.f32 %v497_v55, %v427_v56 }
 0x1b9   : > { %v811_v58 = vpop.f32.mrf.mxu1 }
 0x1d7   : > { %v584_v60 = vpop.f32.mrf.mxu1 }
 0x1d8   : > { %v588_v62 = vadd.f32 %v584_v60, %v498_v59 }
 0x1d9   : > { %v881_v63 = vpop.f32.mrf.mxu1 }
 0x1da   : > { %v590_v0 = vadd.f32 %v589_v61, %v588_v62 }
 0x1dc   : > { %v591_v1 = vadd.f32 %v590_v0, %v1234_v2 }
 0x1de   : > { %v592_v3 = vmax.f32 %v591_v1, 0.0 }
 0x1e0   : > { %593 = vst [vmem:[%s227_s12] sm:$0xf] %v592_v3 }
 0x1e1   : > { %1007 = shalt.err (!%p1004_p6)
}
 0x1e2   : > { %s1008_s6 = scalar_lea.hbm %s608_s19, 64  ;;  %s1012_s10 = scalar_lea.hbm %s1345_s4, 256 }
 0x1e3   : > { %p1009_p7 = scmp.ne.s32.totalorder %s608_s19, %s1008_s6  ;;  %p1013_p13 = scmp.lt.s32.totalorder %s608_s19, %s1345_s4 }
 0x1e4   : > { %p1014_p1 = scmp.lt.s32.totalorder %s1012_s10, %s1008_s6 }
 0x1e5   : > { %p1010_p9 = pnand %p1009_p7, %p1175_p3 }
 0x1e6   : > { %p1015_p10 = por %p1014_p1, %p1013_p13 }
 0x1e7   : > { %p1011_p11 = pneg %p1010_p9 }
 0x1e9   : > { %p1016_p12 = pnand %p1015_p10, %p1011_p11 }
 0x1eb   : > { %1019 = shalt.err (!%p1016_p12)
}
 0x1ec   : > { %886 = dma.vmem_to_hbm [thread:$0]  (%p1175_p3), %s611_s8, 64, %s608_s19, %s595_s23  }
 0x1ed PF: > { %p898_p0 = scmp.ge.s32.totalorder %s1090_s22, 2  ;;  %s622_s13 = sand.u32 1, %s1062_s15  }
 0x1ee   : > { %s623_s14 = scalar_lea.sflag [#allocation4], %s622_s13 }
 0x1ef   : > { %p893_p2 = pnand %p898_p0, %p1184_p8 }
 0x1f1   : > { %p894_p4 = pneg %p893_p2 }
 0x1f3   : > { %1057 = dma.done.wait (%p894_p4), %s623_s14, 64  }
 0x1f4   : > { %1059 = vsyncadd (%p894_p4), %s623_s14, 4294967232  ;;  %s18_s22 = sadd.s32 1, %s1090_s22   ;;  %s1351_s15 = smov %s1066_s16 }
 0x1f5   : > { %p15_p5 = scmp.ge.s32.totalorder %s18_s22, 6   ;;  %s1352_s16 = smov %s1070_s17 }
 0x1f6   : > { %s1353_s17 = smov %s1202_s9  ;;  %s1354_s18 = smov %s1082_s20 }
 0x1f7   : > { %s1355_s19 = smov %s1086_s21  ;;  %s1356_s20 = smov %s1359_s25 }
 0x1f8   : > { %s1357_s21 = smov %s1363_s26  ;;  %17 = sbr.rel (!%p15_p5) target bundleno = 6 (0x6), region = 78 }
 0x1fd   :  { %628 = vsyncpa [#allocation3], 1 }
 0x1fe   :  { %630 = vsyncpa [#allocation3 + $0x1], 1 }
 0x1ff   :  { %631 = vsyncpa [#allocation4], 1 }
 0x200   :  { %633 = vsyncpa [#allocation4 + $0x1], 1 }

</bundles_post_ra>
